<compile_context>
chip_gen: v5e
topology: v5e:2x2
jax: 0.10.0
libtpu: 0.0.40
codegen_flags: <defaults>
</compile_context>

<pallas_src>
import functools

import jax
import jax.numpy as jnp
from jax import lax
from jax.experimental import pallas as pl
from jax.experimental.pallas import tpu as pltpu

DIM = 32
NUM_HEADS = 4
HEAD_DIM = DIM // NUM_HEADS
DECAY = 0.95
EPS = 1e-5  # torch.nn.GroupNorm default


def retention_kernel(x_ref, wqkv_ref, bqkv_ref, wo_ref, bo_ref, gamma_ref,
                     beta_ref, mask_ref, ind_ref, p_ref, g_ref, o_ref,
                     *, tb, seq, dim, heads):
    S, D, H = seq, dim, heads
    hd = D // H
    rows = tb * S

    x = x_ref[...].astype(jnp.float32)                                  # (rows, D)

    # Fused q/k/v projection: one (rows, D) @ (D, 3D) MXU matmul.
    qkv = jnp.dot(x, wqkv_ref[...],
                  preferred_element_type=jnp.float32) + bqkv_ref[...]   # (rows, 3D)
    q = qkv[:, 0 * D:1 * D].reshape(tb, S, D)
    k = qkv[:, 1 * D:2 * D].reshape(tb, S, D)
    v = qkv[:, 2 * D:3 * D].reshape(tb, S, D)

    # Block-diagonal head packing: ind[h*S + j, d] == 1 iff channel d belongs
    # to head h, so contracting q against (tiled K * ind) over the full D only
    # mixes within-head channels.  One batched matmul then yields every head's
    # (S, S) score block side by side; the second one puts each head's output
    # straight into its own channel slice (heads come out pre-interleaved).
    ind = ind_ref[...]                                                  # (H*S, D)
    k_bd = jnp.concatenate([k] * H, axis=1) * ind                       # (tb, H*S, D)
    v_bd = jnp.concatenate([v] * H, axis=1) * ind                       # (tb, H*S, D)

    scores = jnp.einsum('bid,bcd->bic', q, k_bd,
                        preferred_element_type=jnp.float32)             # (tb, S, H*S)
    scores = scores * mask_ref[...]                                     # decay mask, tiled per head
    attn = jnp.einsum('bic,bcd->bid', scores, v_bd,
                      preferred_element_type=jnp.float32)               # (tb, S, D)

    out = jnp.dot(attn.reshape(rows, D), wo_ref[...],
                  preferred_element_type=jnp.float32) + bo_ref[...]     # (rows, D)

    # GroupNorm(H, D): stats per (batch, group) over S*hd elements.  P sums
    # rows of the same batch, G sums channels of the same group, so mean/var
    # for every element come from two small constant matmuls (pure 2D).
    inv_n = jnp.float32(1.0 / (S * hd))
    p_mat = p_ref[...]                                                  # (rows, rows)
    g_mat = g_ref[...]                                                  # (D, D)
    mu = jnp.dot(jnp.dot(p_mat, out, preferred_element_type=jnp.float32),
                 g_mat, preferred_element_type=jnp.float32) * inv_n
    cen = out - mu
    var = jnp.dot(jnp.dot(p_mat, cen * cen, preferred_element_type=jnp.float32),
                  g_mat, preferred_element_type=jnp.float32) * inv_n
    y = cen * lax.rsqrt(var + EPS) * gamma_ref[...] + beta_ref[...]     # (rows, D)

    # Lane-dense store: pack each batch's (S, D) rows into one S*D = 256-lane
    # row so the final write is a full-lane (unmasked) store.
    y3 = y.reshape(tb, S, D)
    y_dense = jnp.concatenate([y3[:, s:s + 1, :] for s in range(S)],
                              axis=-1)                                  # (tb, 1, S*D)
    o_ref[...] = y_dense.astype(o_ref.dtype)
    # TODO(synk): nn.Dropout is defined in __init__ but never applied in forward(); omitted.


def parallel_retention(x, params, *, batch_tiles=1):
    B, S, D = x.shape
    H = NUM_HEADS
    hd = D // H
    assert D % H == 0 and B % batch_tiles == 0
    tb = B // batch_tiles            # batches folded into each grid step
    rows = tb * S

    x2 = x.reshape(B * S, D)

    # Constant operands, built once in the wrapper.
    i = jnp.arange(S)[:, None]
    j = jnp.arange(S)[None, :]
    base_mask = jnp.where(i >= j, DECAY ** (i - j).astype(jnp.float32), 0.0)
    mask_tiled = jnp.tile(base_mask, (1, H)).astype(jnp.float32)          # (S, H*S)

    ch_head = jnp.arange(D) // hd                                         # channel -> head
    col_head = jnp.arange(H * S) // S                                     # packed col -> head
    ind_bd = (col_head[:, None] == ch_head[None, :]).astype(jnp.float32)  # (H*S, D)

    row_batch = jnp.arange(rows) // S
    p_mat = (row_batch[:, None] == row_batch[None, :]).astype(jnp.float32)  # (rows, rows)
    g_mat = (ch_head[:, None] == ch_head[None, :]).astype(jnp.float32)      # (D, D)

    kernel = functools.partial(retention_kernel, tb=tb, seq=S, dim=D, heads=H)

    def const(shape):
        nd = len(shape)
        return pl.BlockSpec(shape, lambda t, _nd=nd: (0,) * _nd)

    out = pl.pallas_call(
        kernel,
        out_shape=jax.ShapeDtypeStruct((B, 1, S * D), x.dtype),
        grid=(batch_tiles,),
        in_specs=[
            pl.BlockSpec((rows, D), lambda t: (t, 0)),      # x, batch-folded rows
            const((D, 3 * D)), const((1, 3 * D)),           # fused Wqkv, bqkv
            const((D, D)), const((1, D)),                   # Wo, bo
            const((1, D)), const((1, D)),                   # gamma, beta
            const((S, H * S)),                              # tiled decay mask
            const((H * S, D)),                              # head block-diag indicator
            const((rows, rows)),                            # GroupNorm batch-row summator
            const((D, D)),                                  # GroupNorm group-channel summator
        ],
        out_specs=pl.BlockSpec((tb, 1, S * D), lambda t: (t, 0, 0)),
        compiler_params=pltpu.CompilerParams(
            dimension_semantics=("parallel",)),             # batch_tiles>1 shards over v7x's 2 TCs
    )(x2, params["wqkv_t"], params["bqkv"], params["wo_t"], params["bo"],
      params["gamma"], params["beta"], mask_tiled, ind_bd, p_mat, g_mat)

    return out.reshape(B, S, D)


def reference(x, p):
    """Pure-JAX reference mirroring the PyTorch forward exactly."""
    B, S, D = x.shape
    H, hd = NUM_HEADS, HEAD_DIM
    q = (x @ p["wq_t"] + p["bq"]).reshape(B, S, H, hd).transpose(0, 2, 1, 3)
    k = (x @ p["wk_t"] + p["bk"]).reshape(B, S, H, hd).transpose(0, 2, 1, 3)
    v = (x @ p["wv_t"] + p["bv"]).reshape(B, S, H, hd).transpose(0, 2, 1, 3)
    i = jnp.arange(S)[:, None]
    j = jnp.arange(S)[None, :]
    mask = jnp.where(i >= j, DECAY ** (i - j).astype(jnp.float32), 0.0)
    scores = jnp.einsum("bhid,bhjd->bhij", q, k) * mask
    out = jnp.einsum("bhij,bhjd->bhid", scores, v)
    out = out.transpose(0, 2, 1, 3).reshape(B, S, D)
    out = out @ p["wo_t"] + p["bo"]
    g = out.transpose(0, 2, 1).reshape(B, H, hd, S)
    mu = g.mean(axis=(2, 3), keepdims=True)
    var = ((g - mu) ** 2).mean(axis=(2, 3), keepdims=True)
    gn = (g - mu) / jnp.sqrt(var + EPS)
    gn = gn.reshape(B, D, S) * p["gamma"].reshape(1, D, 1) + p["beta"].reshape(1, D, 1)
    return gn.transpose(0, 2, 1)


def init_params(key, dim):
    keys = jax.random.split(key, 10)
    scale = 1.0 / jnp.sqrt(dim)

    def lin(kw, kb):
        w = jax.random.uniform(kw, (dim, dim), jnp.float32, -scale, scale)  # (out, in)
        b = jax.random.uniform(kb, (1, dim), jnp.float32, -scale, scale)
        return w.T, b  # pre-transpose to (in, out)

    wq_t, bq = lin(keys[0], keys[1])
    wk_t, bk = lin(keys[2], keys[3])
    wv_t, bv = lin(keys[4], keys[5])
    wo_t, bo = lin(keys[6], keys[7])
    gamma = 1.0 + 0.1 * jax.random.normal(keys[8], (1, dim), jnp.float32)
    beta = 0.1 * jax.random.normal(keys[9], (1, dim), jnp.float32)
    return dict(wq_t=wq_t, bq=bq, wk_t=wk_t, bk=bk, wv_t=wv_t, bv=bv,
                wo_t=wo_t, bo=bo, gamma=gamma, beta=beta,
                # fused QKV (single projection matmul in the kernel)
                wqkv_t=jnp.concatenate([wq_t, wk_t, wv_t], axis=1),
                bqkv=jnp.concatenate([bq, bk, bv], axis=1))


if __name__ == "__main__":
    B, S, D = 2, 8, DIM
    key = jax.random.PRNGKey(0)
    kx, kp = jax.random.split(key)
    x = jax.random.normal(kx, (B, S, D), jnp.float32)
    params = init_params(kp, D)

    ref = jax.block_until_ready(reference(x, params))

    # Default: all batches folded into one grid step (best for v5e/v6e).
    out = jax.block_until_ready(parallel_retention(x, params))
    assert out.shape == (B, S, D)
    assert jnp.allclose(out, ref, rtol=1e-4, atol=1e-4), float(jnp.max(jnp.abs(out - ref)))

    # Two parallel batch tiles (one per TensorCore on v7x).
    out2 = jax.block_until_ready(parallel_retention(x, params, batch_tiles=2))
    assert jnp.allclose(out2, ref, rtol=1e-4, atol=1e-4), float(jnp.max(jnp.abs(out2 - ref)))

    print("KERNEL_OK")
</pallas_src>

<mosaic_0001>
module attributes {stable_mosaic.version = 11 : i64} {
  func.func @retention_kernel(%arg0: i32, %arg1: memref<16x32xf32, #tpu.memory_space<vmem>>, %arg2: memref<32x96xf32, #tpu.memory_space<vmem>>, %arg3: memref<1x96xf32, #tpu.memory_space<vmem>>, %arg4: memref<32x32xf32, #tpu.memory_space<vmem>>, %arg5: memref<1x32xf32, #tpu.memory_space<vmem>>, %arg6: memref<1x32xf32, #tpu.memory_space<vmem>>, %arg7: memref<1x32xf32, #tpu.memory_space<vmem>>, %arg8: memref<8x32xf32, #tpu.memory_space<vmem>>, %arg9: memref<32x32xf32, #tpu.memory_space<vmem>>, %arg10: memref<16x16xf32, #tpu.memory_space<vmem>>, %arg11: memref<32x32xf32, #tpu.memory_space<vmem>>, %arg12: memref<2x1x256xf32, #tpu.memory_space<vmem>>) attributes {dimension_semantics = [#tpu.dimension_semantics<parallel>], iteration_bounds = array<i64: 1>, scalar_prefetch = 0 : i64, scratch_operands = 0 : i64, tpu.core_type = #tpu.core_type<tc>, window_params = [{transform_indices = @transform_0, window_bounds = array<i64: 16, 32>}, {pipeline_mode = #tpu.pipeline_mode<synchronous>, transform_indices = @transform_1, window_bounds = array<i64: 32, 96>}, {pipeline_mode = #tpu.pipeline_mode<synchronous>, transform_indices = @transform_2, window_bounds = array<i64: 1, 96>}, {pipeline_mode = #tpu.pipeline_mode<synchronous>, transform_indices = @transform_3, window_bounds = array<i64: 32, 32>}, {pipeline_mode = #tpu.pipeline_mode<synchronous>, transform_indices = @transform_4, window_bounds = array<i64: 1, 32>}, {pipeline_mode = #tpu.pipeline_mode<synchronous>, transform_indices = @transform_5, window_bounds = array<i64: 1, 32>}, {pipeline_mode = #tpu.pipeline_mode<synchronous>, transform_indices = @transform_6, window_bounds = array<i64: 1, 32>}, {pipeline_mode = #tpu.pipeline_mode<synchronous>, transform_indices = @transform_7, window_bounds = array<i64: 8, 32>}, {pipeline_mode = #tpu.pipeline_mode<synchronous>, transform_indices = @transform_8, window_bounds = array<i64: 32, 32>}, {pipeline_mode = #tpu.pipeline_mode<synchronous>, transform_indices = @transform_9, window_bounds = array<i64: 16, 16>}, {pipeline_mode = #tpu.pipeline_mode<synchronous>, transform_indices = @transform_10, window_bounds = array<i64: 32, 32>}, {transform_indices = @transform_11, window_bounds = array<i64: 2, 1, 256>}]} {
    %c0 = arith.constant 0 : index
    %c0_0 = arith.constant 0 : index
    %0 = vector.load %arg1[%c0, %c0_0] : memref<16x32xf32, #tpu.memory_space<vmem>>, vector<16x32xf32>
    %c0_1 = arith.constant 0 : index
    %c0_2 = arith.constant 0 : index
    %1 = vector.load %arg2[%c0_1, %c0_2] : memref<32x96xf32, #tpu.memory_space<vmem>>, vector<32x96xf32>
    %cst = arith.constant dense<0.000000e+00> : vector<16x96xf32>
    %2 = tpu.matmul %0, %1, %cst {dimension_numbers = #tpu.dot_dimension_numbers<[1], [0], [0], [1], [0, 0, 1, 1], [], []>} : vector<16x32xf32>, vector<32x96xf32>, vector<16x96xf32> -> vector<16x96xf32>
    %c0_3 = arith.constant 0 : index
    %c0_4 = arith.constant 0 : index
    %3 = vector.load %arg3[%c0_3, %c0_4] : memref<1x96xf32, #tpu.memory_space<vmem>>, vector<1x96xf32>
    %4 = vector.broadcast %3 : vector<1x96xf32> to vector<16x96xf32>
    %5 = arith.addf %2, %4 : vector<16x96xf32>
    %6 = vector.extract_strided_slice %5 {offsets = [0, 0], sizes = [16, 32], strides = [1, 1]} : vector<16x96xf32> to vector<16x32xf32>
    %7 = vector.shape_cast %6 : vector<16x32xf32> to vector<2x8x32xf32>
    %8 = vector.extract_strided_slice %5 {offsets = [0, 32], sizes = [16, 32], strides = [1, 1]} : vector<16x96xf32> to vector<16x32xf32>
    %9 = vector.shape_cast %8 : vector<16x32xf32> to vector<2x8x32xf32>
    %10 = vector.extract_strided_slice %5 {offsets = [0, 64], sizes = [16, 32], strides = [1, 1]} : vector<16x96xf32> to vector<16x32xf32>
    %11 = vector.shape_cast %10 : vector<16x32xf32> to vector<2x8x32xf32>
    %c0_5 = arith.constant 0 : index
    %c0_6 = arith.constant 0 : index
    %12 = vector.load %arg9[%c0_5, %c0_6] : memref<32x32xf32, #tpu.memory_space<vmem>>, vector<32x32xf32>
    %13 = tpu.concatenate %9, %9, %9, %9 in 1 : vector<2x8x32xf32>, vector<2x8x32xf32>, vector<2x8x32xf32>, vector<2x8x32xf32> -> vector<2x32x32xf32>
    %14 = vector.shape_cast %12 : vector<32x32xf32> to vector<1x32x32xf32>
    %15 = vector.broadcast %14 : vector<1x32x32xf32> to vector<2x32x32xf32>
    %16 = arith.mulf %13, %15 : vector<2x32x32xf32>
    %17 = tpu.concatenate %11, %11, %11, %11 in 1 : vector<2x8x32xf32>, vector<2x8x32xf32>, vector<2x8x32xf32>, vector<2x8x32xf32> -> vector<2x32x32xf32>
    %18 = vector.shape_cast %12 : vector<32x32xf32> to vector<1x32x32xf32>
    %19 = vector.broadcast %18 : vector<1x32x32xf32> to vector<2x32x32xf32>
    %20 = arith.mulf %17, %19 : vector<2x32x32xf32>
    "tpu.trace_start"() <{level = 10 : i32, message = "bid,bcd->bic"}> : () -> ()
    %cst_7 = arith.constant dense<0.000000e+00> : vector<2x8x32xf32>
    %21 = tpu.matmul %7, %16, %cst_7 {dimension_numbers = #tpu.dot_dimension_numbers<[2], [2], [1], [1], [0, 0, 0, 1, 1, 1], [0], [0]>} : vector<2x8x32xf32>, vector<2x32x32xf32>, vector<2x8x32xf32> -> vector<2x8x32xf32>
    "tpu.trace_stop"() : () -> ()
    %c0_8 = arith.constant 0 : index
    %c0_9 = arith.constant 0 : index
    %22 = vector.load %arg8[%c0_8, %c0_9] : memref<8x32xf32, #tpu.memory_space<vmem>>, vector<8x32xf32>
    %23 = vector.shape_cast %22 : vector<8x32xf32> to vector<1x8x32xf32>
    %24 = vector.broadcast %23 : vector<1x8x32xf32> to vector<2x8x32xf32>
    %25 = arith.mulf %21, %24 : vector<2x8x32xf32>
    "tpu.trace_start"() <{level = 10 : i32, message = "bic,bcd->bid"}> : () -> ()
    %cst_10 = arith.constant dense<0.000000e+00> : vector<2x8x32xf32>
    %26 = tpu.matmul %25, %20, %cst_10 {dimension_numbers = #tpu.dot_dimension_numbers<[2], [1], [1], [2], [0, 0, 0, 1, 1, 2], [0], [0]>} : vector<2x8x32xf32>, vector<2x32x32xf32>, vector<2x8x32xf32> -> vector<2x8x32xf32>
    "tpu.trace_stop"() : () -> ()
    %27 = vector.shape_cast %26 : vector<2x8x32xf32> to vector<16x32xf32>
    %c0_11 = arith.constant 0 : index
    %c0_12 = arith.constant 0 : index
    %28 = vector.load %arg4[%c0_11, %c0_12] : memref<32x32xf32, #tpu.memory_space<vmem>>, vector<32x32xf32>
    %cst_13 = arith.constant dense<0.000000e+00> : vector<16x32xf32>
    %29 = tpu.matmul %27, %28, %cst_13 {dimension_numbers = #tpu.dot_dimension_numbers<[1], [0], [0], [1], [0, 0, 1, 1], [], []>} : vector<16x32xf32>, vector<32x32xf32>, vector<16x32xf32> -> vector<16x32xf32>
    %c0_14 = arith.constant 0 : index
    %c0_15 = arith.constant 0 : index
    %30 = vector.load %arg5[%c0_14, %c0_15] : memref<1x32xf32, #tpu.memory_space<vmem>>, vector<1x32xf32>
    %31 = vector.broadcast %30 : vector<1x32xf32> to vector<16x32xf32>
    %32 = arith.addf %29, %31 : vector<16x32xf32>
    %c0_16 = arith.constant 0 : index
    %c0_17 = arith.constant 0 : index
    %33 = vector.load %arg10[%c0_16, %c0_17] : memref<16x16xf32, #tpu.memory_space<vmem>>, vector<16x16xf32>
    %c0_18 = arith.constant 0 : index
    %c0_19 = arith.constant 0 : index
    %34 = vector.load %arg11[%c0_18, %c0_19] : memref<32x32xf32, #tpu.memory_space<vmem>>, vector<32x32xf32>
    %cst_20 = arith.constant dense<0.000000e+00> : vector<16x32xf32>
    %35 = tpu.matmul %33, %32, %cst_20 {dimension_numbers = #tpu.dot_dimension_numbers<[1], [0], [0], [1], [0, 0, 1, 1], [], []>} : vector<16x16xf32>, vector<16x32xf32>, vector<16x32xf32> -> vector<16x32xf32>
    %cst_21 = arith.constant dense<0.000000e+00> : vector<16x32xf32>
    %36 = tpu.matmul %35, %34, %cst_21 {dimension_numbers = #tpu.dot_dimension_numbers<[1], [0], [0], [1], [0, 0, 1, 1], [], []>} : vector<16x32xf32>, vector<32x32xf32>, vector<16x32xf32> -> vector<16x32xf32>
    %cst_22 = arith.constant 1.562500e-02 : f32
    %37 = vector.broadcast %cst_22 : f32 to vector<16x32xf32>
    %38 = arith.mulf %36, %37 : vector<16x32xf32>
    %39 = arith.subf %32, %38 : vector<16x32xf32>
    %40 = arith.mulf %39, %39 : vector<16x32xf32>
    %cst_23 = arith.constant dense<0.000000e+00> : vector<16x32xf32>
    %41 = tpu.matmul %33, %40, %cst_23 {dimension_numbers = #tpu.dot_dimension_numbers<[1], [0], [0], [1], [0, 0, 1, 1], [], []>} : vector<16x16xf32>, vector<16x32xf32>, vector<16x32xf32> -> vector<16x32xf32>
    %cst_24 = arith.constant dense<0.000000e+00> : vector<16x32xf32>
    %42 = tpu.matmul %41, %34, %cst_24 {dimension_numbers = #tpu.dot_dimension_numbers<[1], [0], [0], [1], [0, 0, 1, 1], [], []>} : vector<16x32xf32>, vector<32x32xf32>, vector<16x32xf32> -> vector<16x32xf32>
    %cst_25 = arith.constant 1.562500e-02 : f32
    %43 = vector.broadcast %cst_25 : f32 to vector<16x32xf32>
    %44 = arith.mulf %42, %43 : vector<16x32xf32>
    %cst_26 = arith.constant 9.99999974E-6 : f32
    %45 = vector.broadcast %cst_26 : f32 to vector<16x32xf32>
    %46 = arith.addf %44, %45 : vector<16x32xf32>
    %47 = math.rsqrt %46 : vector<16x32xf32>
    %48 = arith.mulf %39, %47 : vector<16x32xf32>
    %c0_27 = arith.constant 0 : index
    %c0_28 = arith.constant 0 : index
    %49 = vector.load %arg6[%c0_27, %c0_28] : memref<1x32xf32, #tpu.memory_space<vmem>>, vector<1x32xf32>
    %50 = vector.broadcast %49 : vector<1x32xf32> to vector<16x32xf32>
    %51 = arith.mulf %48, %50 : vector<16x32xf32>
    %c0_29 = arith.constant 0 : index
    %c0_30 = arith.constant 0 : index
    %52 = vector.load %arg7[%c0_29, %c0_30] : memref<1x32xf32, #tpu.memory_space<vmem>>, vector<1x32xf32>
    %53 = vector.broadcast %52 : vector<1x32xf32> to vector<16x32xf32>
    %54 = arith.addf %51, %53 : vector<16x32xf32>
    %55 = vector.shape_cast %54 : vector<16x32xf32> to vector<2x8x32xf32>
    %56 = vector.extract_strided_slice %55 {offsets = [0, 0, 0], sizes = [2, 1, 32], strides = [1, 1, 1]} : vector<2x8x32xf32> to vector<2x1x32xf32>
    %57 = vector.extract_strided_slice %55 {offsets = [0, 1, 0], sizes = [2, 1, 32], strides = [1, 1, 1]} : vector<2x8x32xf32> to vector<2x1x32xf32>
    %58 = vector.extract_strided_slice %55 {offsets = [0, 2, 0], sizes = [2, 1, 32], strides = [1, 1, 1]} : vector<2x8x32xf32> to vector<2x1x32xf32>
    %59 = vector.extract_strided_slice %55 {offsets = [0, 3, 0], sizes = [2, 1, 32], strides = [1, 1, 1]} : vector<2x8x32xf32> to vector<2x1x32xf32>
    %60 = vector.extract_strided_slice %55 {offsets = [0, 4, 0], sizes = [2, 1, 32], strides = [1, 1, 1]} : vector<2x8x32xf32> to vector<2x1x32xf32>
    %61 = vector.extract_strided_slice %55 {offsets = [0, 5, 0], sizes = [2, 1, 32], strides = [1, 1, 1]} : vector<2x8x32xf32> to vector<2x1x32xf32>
    %62 = vector.extract_strided_slice %55 {offsets = [0, 6, 0], sizes = [2, 1, 32], strides = [1, 1, 1]} : vector<2x8x32xf32> to vector<2x1x32xf32>
    %63 = vector.extract_strided_slice %55 {offsets = [0, 7, 0], sizes = [2, 1, 32], strides = [1, 1, 1]} : vector<2x8x32xf32> to vector<2x1x32xf32>
    %64 = tpu.concatenate %56, %57, %58, %59, %60, %61, %62, %63 in 2 : vector<2x1x32xf32>, vector<2x1x32xf32>, vector<2x1x32xf32>, vector<2x1x32xf32>, vector<2x1x32xf32>, vector<2x1x32xf32>, vector<2x1x32xf32>, vector<2x1x32xf32> -> vector<2x1x256xf32>
    %c0_31 = arith.constant 0 : index
    %c0_32 = arith.constant 0 : index
    %c0_33 = arith.constant 0 : index
    %65 = vector.load %arg12[%c0_31, %c0_32, %c0_33] : memref<2x1x256xf32, #tpu.memory_space<vmem>>, vector<2x1x256xf32>
    tpu.vector_store %arg12[%c0_31, %c0_32, %c0_33], %64 {strides = array<i32>} : memref<2x1x256xf32, #tpu.memory_space<vmem>>, vector<2x1x256xf32>,
    return
  }
  func.func @transform_0(%arg0: i32) -> (i32, i32) {
    %c0_i32 = arith.constant 0 : i32
    %c0_i32_0 = arith.constant 0 : i32
    return %arg0, %c0_i32 : i32, i32
  }
  func.func @transform_1(%arg0: i32) -> (i32, i32) {
    %c0_i32 = arith.constant 0 : i32
    %c0_i32_0 = arith.constant 0 : i32
    %c0_i32_1 = arith.constant 0 : i32
    return %c0_i32, %c0_i32_0 : i32, i32
  }
  func.func @transform_2(%arg0: i32) -> (i32, i32) {
    %c0_i32 = arith.constant 0 : i32
    %c0_i32_0 = arith.constant 0 : i32
    %c0_i32_1 = arith.constant 0 : i32
    return %c0_i32, %c0_i32_0 : i32, i32
  }
  func.func @transform_3(%arg0: i32) -> (i32, i32) {
    %c0_i32 = arith.constant 0 : i32
    %c0_i32_0 = arith.constant 0 : i32
    %c0_i32_1 = arith.constant 0 : i32
    return %c0_i32, %c0_i32_0 : i32, i32
  }
  func.func @transform_4(%arg0: i32) -> (i32, i32) {
    %c0_i32 = arith.constant 0 : i32
    %c0_i32_0 = arith.constant 0 : i32
    %c0_i32_1 = arith.constant 0 : i32
    return %c0_i32, %c0_i32_0 : i32, i32
  }
  func.func @transform_5(%arg0: i32) -> (i32, i32) {
    %c0_i32 = arith.constant 0 : i32
    %c0_i32_0 = arith.constant 0 : i32
    %c0_i32_1 = arith.constant 0 : i32
    return %c0_i32, %c0_i32_0 : i32, i32
  }
  func.func @transform_6(%arg0: i32) -> (i32, i32) {
    %c0_i32 = arith.constant 0 : i32
    %c0_i32_0 = arith.constant 0 : i32
    %c0_i32_1 = arith.constant 0 : i32
    return %c0_i32, %c0_i32_0 : i32, i32
  }
  func.func @transform_7(%arg0: i32) -> (i32, i32) {
    %c0_i32 = arith.constant 0 : i32
    %c0_i32_0 = arith.constant 0 : i32
    %c0_i32_1 = arith.constant 0 : i32
    return %c0_i32, %c0_i32_0 : i32, i32
  }
  func.func @transform_8(%arg0: i32) -> (i32, i32) {
    %c0_i32 = arith.constant 0 : i32
    %c0_i32_0 = arith.constant 0 : i32
    %c0_i32_1 = arith.constant 0 : i32
    return %c0_i32, %c0_i32_0 : i32, i32
  }
  func.func @transform_9(%arg0: i32) -> (i32, i32) {
    %c0_i32 = arith.constant 0 : i32
    %c0_i32_0 = arith.constant 0 : i32
    %c0_i32_1 = arith.constant 0 : i32
    return %c0_i32, %c0_i32_0 : i32, i32
  }
  func.func @transform_10(%arg0: i32) -> (i32, i32) {
    %c0_i32 = arith.constant 0 : i32
    %c0_i32_0 = arith.constant 0 : i32
    %c0_i32_1 = arith.constant 0 : i32
    return %c0_i32, %c0_i32_0 : i32, i32
  }
  func.func @transform_11(%arg0: i32) -> (i32, i32, i32) {
    %c0_i32 = arith.constant 0 : i32
    %c0_i32_0 = arith.constant 0 : i32
    %c0_i32_1 = arith.constant 0 : i32
    return %arg0, %c0_i32, %c0_i32_0 : i32, i32, i32
  }
}

</mosaic_0001>

<bundles_post_ra>
// kernel: tpu_custom_call.1
= control target key start
LH: loop header
LB: loop body
LE: loop exit
PB: predicated region body
PF: predicated region fallthrough
CT: control target
= control target key end

     0   :  { %16 = vsyncpa [#allocation3], 0  ;;  %s1172_s0 = inlined_call_operand.hbm [shape: f32[16,32], index: 0, kind: input, shape index: {}]   ;;  %s1173_s1 = inlined_call_operand.hbm [shape: f32[32,96], index: 1, kind: input, shape index: {}]   ;;  %s1174_s2 = inlined_call_operand.vmem [shape: f32[1,96], index: 2, kind: input, shape index: {}]   ;;  %s1175_s3 = inlined_call_operand.hbm [shape: f32[32,32], index: 3, kind: input, shape index: {}]   ;;  %s1176_s4 = inlined_call_operand.vmem [shape: f32[1,32], index: 4, kind: input, shape index: {}]   ;;  %s1177_s5 = inlined_call_operand.vmem [shape: f32[1,32], index: 5, kind: input, shape index: {}]   ;;  %s1178_s6 = inlined_call_operand.vmem [shape: f32[1,32], index: 6, kind: input, shape index: {}]   ;;  %s1179_s7 = inlined_call_operand.hbm [shape: f32[8,32], index: 7, kind: input, shape index: {}]   ;;  %s1180_s8 = inlined_call_operand.hbm [shape: f32[32,32], index: 8, kind: input, shape index: {}]   ;;  %s1181_s9 = inlined_call_operand.hbm [shape: f32[16,16], index: 9, kind: input, shape index: {}]   ;;  %s1182_s10 = inlined_call_operand.hbm [shape: f32[32,32], index: 10, kind: input, shape index: {}]   ;;  %s1183_s11 = inlined_call_operand.hbm [shape: f32[2,1,256], index: 11, kind: output, shape index: {}]  }
   0x1   :  { %17 = vsyncpa [#allocation6], 0 }
   0x2   :  { %18 = vsyncpa [#allocation9], 0 }
   0x3   :  { %19 = vsyncpa [#allocation12], 0 }
   0x4   :  { %20 = vsyncpa [#allocation4], 0  ;;  %s38_s19 = sshll.u32 %s1173_s1, 4  ;;  %s974_s20 = smov [#allocation5]   ;;  %s39_s19 = int_to_ptr.hbm [resolvable:$true] %s38_s19 }
   0x5   :  { %s40_s21 = sshll.u32 %s974_s20, 4  ;;  %s73_s24 = sshll.u32 %s1179_s7, 4  ;;  %s41_s21 = int_to_ptr.vmem [resolvable:$true] %s40_s21  ;;  %s74_s24 = int_to_ptr.hbm [resolvable:$true] %s73_s24 }
   0x6   :  { %s975_s25 = smov 128   ;;  %s976_s26 = smov 8  }
   0x7   :  { %46 = dma.hbm_to_vmem [thread:$0]  %s39_s19, 512, %s41_s21, [#allocation6], %s975_s25, %s975_s25, %s976_s26  }
   0x8   :  { %s977_s27 = smov [#allocation8]   ;;  %s96_s1 = sshll.u32 %s1181_s9, 4  ;;  %s97_s1 = int_to_ptr.hbm [resolvable:$true] %s96_s1 }
   0x9   :  { %s75_s28 = sshll.u32 %s977_s27, 4  ;;  %s25_s7 = sshll.u32 %s1172_s0, 4  ;;  %s76_s28 = int_to_ptr.vmem [resolvable:$true] %s75_s28  ;;  %s26_s7 = int_to_ptr.hbm [resolvable:$true] %s25_s7 }
   0xa   :  { %78 = dma.hbm_to_vmem [thread:$0]  %s74_s24, 128, %s76_s28, [#allocation9]  }
   0xb   :  { %s978_s14 = smov [#allocation11]   ;;  %s979_s16 = smov [#allocation2]  }
   0xc   :  { %s98_s15 = sshll.u32 %s978_s14, 4  ;;  %s27_s17 = sshll.u32 %s979_s16, 4  ;;  %s99_s15 = int_to_ptr.vmem [resolvable:$true] %s98_s15  ;;  %s28_s17 = int_to_ptr.vmem [resolvable:$true] %s27_s17 }
   0xd   :  { %104 = dma.hbm_to_vmem [thread:$0]  %s97_s1, 256, %s99_s15, [#allocation12], %s975_s25, %s975_s25, %s976_s26  }
   0xe   :  { %s53_s9 = sshll.u32 %s1175_s3, 4  ;;  %s83_s21 = sshll.u32 %s1180_s8, 4  ;;  %s54_s9 = int_to_ptr.hbm [resolvable:$true] %s53_s9  ;;  %s84_s21 = int_to_ptr.hbm [resolvable:$true] %s83_s21 }
   0xf   :  { %33 = dma.hbm_to_vmem [thread:$0]  %s26_s7, 256, %s28_s17, [#allocation3], %s975_s25, %s975_s25, %s976_s26  }
  0x10   :  { %s980_s22 = smov [#allocation7]   ;;  %s981_s24 = smov [#allocation10]  }
  0x11   :  { %s55_s23 = sshll.u32 %s980_s22, 4  ;;  %s85_s3 = sshll.u32 %s981_s24, 4  ;;  %s56_s23 = int_to_ptr.vmem [resolvable:$true] %s55_s23  ;;  %s86_s3 = int_to_ptr.vmem [resolvable:$true] %s85_s3 }
  0x12   :  { %61 = dma.hbm_to_vmem [thread:$0]  %s54_s9, 512, %s56_s23, [#allocation6], %s975_s25, %s975_s25, %s976_s26  }
  0x13   :  { %s109_s29 = sshll.u32 %s1182_s10, 4  ;;  %s982_s8 = smov [#allocation13]   ;;  %s110_s29 = int_to_ptr.hbm [resolvable:$true] %s109_s29 }
  0x14   :  { %91 = dma.hbm_to_vmem [thread:$0]  %s84_s21, 512, %s86_s3, [#allocation9], %s975_s25, %s975_s25, %s976_s26  }
  0x15   :  { %s111_s30 = sshll.u32 %s982_s8, 4  ;;  %s112_s30 = int_to_ptr.vmem [resolvable:$true] %s111_s30 }
  0x16   :  { %117 = dma.hbm_to_vmem [thread:$0]  %s110_s29, 512, %s112_s30, [#allocation12], %s975_s25, %s975_s25, %s976_s26  }
  0x17   :  { %964 = dma.done.wait [#allocation3], 256  }
  0x18   :  { %965 = vsyncadd [#allocation3], 4294967040 }
  0x19   :  { %966 = dma.done.wait [#allocation6], 1024  }
  0x1a   :  { %967 = vsyncadd [#allocation6], 4294966272 }
  0x1b   :  { %968 = dma.done.wait [#allocation9], 640  }
  0x1c   :  { %969 = vsyncadd [#allocation9], 4294966656 }
  0x1d   :  { %970 = dma.done.wait [#allocation12], 768  }
  0x1e   :  { %971 = vsyncadd [#allocation12], 4294966528  ;;  %v151_v0 = vld [vmem:[#allocation5 + $0x18] sm:$0xff]  ;;  %v150_v1 = vld [vmem:[#allocation5 + $0x10] sm:$0xff]  ;;  %s983_s10 = smov 32   ;;  %vm156_vm0 = vcmask 261120  }
  0x1f   :  { %175 = vmatpush.msra.mxu1 %v151_v0  ;;  %v189_v2 = vld [vmem:[#allocation10 + $0x18] sm:$0xff]  ;;  %v149_v3 = vld [vmem:[#allocation5 + $0x8] sm:$0xff]  ;;  %v187_v4 = vld [vmem:[#allocation10 + $0x8] sm:$0xff]  ;;  %s984_s1 = smov 96   ;;  %vm444_vm1 = vcmask 130048   ;;  %vm655_vm8 = vcmask 523264  }
  0x20   :  { %200 = vrot.lane.b32.xlu0 %v189_v2, %s983_s10  ;;  %196 = vrot.lane.b32.xlu1 %v187_v4, %s983_s10  ;;  %v148_v5 = vld [vmem:[#allocation5] sm:$0xff]  ;;  %v146_v6 = vld [vmem:[#allocation2] sm:$0xff]  ;;  %v188_v7 = vld [vmem:[#allocation10 + $0x10] sm:$0xff]  ;;  %vm658_vm9 = vcmask 785408   ;;  %vm673_vm10 = vcmask 1040384   ;;  %s690_s18 = sshll.u32 %s1183_s11, 4  ;;  %s691_s18 = int_to_ptr.hbm [resolvable:$true] %s690_s18 }
  0x21   :  { %176 = vmatpush.msra.mxu1 %v150_v1  ;;  %v186_v8 = vld [vmem:[#allocation10] sm:$0xff]  ;;  %v147_v9 = vld [vmem:[#allocation2 + $0x8] sm:$0xff]  ;;  %v764_v11 = vld [vmem:[%s1174_s2] ss:$0 sm:$0xff]  ;;  %s985_s2 = smov 64   ;;  %s987_s11 = smov 2  }
  0x22   :  { %v404_v51 = vld [vmem:[#allocation7 + $0x18] sm:$0xff]  ;;  %v403_v52 = vld [vmem:[#allocation7 + $0x10] sm:$0xff]  ;;  %v402_v53 = vld [vmem:[#allocation7 + $0x8] sm:$0xff] }
  0x23   :  { %177 = vmatpush.msra.mxu1 %v149_v3  ;;  %427 = vmatpush.msra.mxu0 %v404_v51  ;;  %v320_v59 = vld [vmem:[#allocation8] sm:$0xff]  ;;  %v767_v51 = vld [vmem:[%s1178_s6] ss:$0 sm:$0xff] }
  0x25   :  { %178 = vmatpush.msra.mxu1 %v148_v5  ;;  %428 = vmatpush.msra.mxu0 %v403_v52 }
  0x26   :  { %706 = vmatmul.msk.f32.vlgmr.msra.gmra.mxu1 %vm156_vm0, %v146_v6 }
  0x27   :  { %429 = vmatpush.msra.mxu0 %v402_v53 }
  0x28   :  { %198 = vrot.lane.b32.xlu0 %v188_v7, %s983_s10  ;;  %194 = vrot.lane.b32.xlu1 %v186_v8, %s983_s10 }
  0x2e   :  { %707 = vmatmul.msk.f32.gmra.mxu1 %vm156_vm0, %v147_v9 }
  0x92   :  { %v201_v10 = vpop.permute.xlu0 %200  ;;  %v197_v17 = vpop.permute.xlu1 %196 }
  0x9a   :  { %v199_v13 = vpop.permute.xlu0 %198  ;;  %v195_v23 = vpop.permute.xlu1 %194 }
  0xa3   :  { %v180_v12 = vpop.f32.mrf.mxu1 }
  0xa4   :  { %v181_v14 = vadd.f32 %v764_v11, %v180_v12  ;;  %v441_v12 = vld [vmem:[#allocation13 + $0x8] sm:$0xff] }
  0xa6   :  { %v208_v15 = vmul.f32 %v199_v13, %v181_v14  ;;  %v209_v16 = vmul.f32 %v201_v10, %v181_v14  ;;  %v206_v24 = vmul.f32 %v195_v23, %v181_v14  ;;  %v207_v25 = vmul.f32 %v197_v17, %v181_v14 }
  0xa8   :  { %244 = vrot.lane.b32.xlu2 %v209_v16, %s984_s1  ;;  %242 = vrot.lane.b32.xlu0 %v208_v15, %s984_s1 }
  0xab   :  { %v183_v18 = vpop.f32.mrf.mxu1 }
  0xac   :  { %v184_v19 = vadd.f32 %v764_v11, %v183_v18  ;;  %v442_v11 = vld [vmem:[#allocation13 + $0x10] sm:$0xff] }
  0xad   :  { %v438_v18 = vld [vmem:[#allocation11] sm:$0xff] }
  0xae   :  { %v212_v20 = vmul.f32 %v199_v13, %v184_v19  ;;  %v213_v21 = vmul.f32 %v201_v10, %v184_v19  ;;  %v211_v22 = vmul.f32 %v197_v17, %v184_v19  ;;  %v210_v26 = vmul.f32 %v195_v23, %v184_v19  ;;  %v443_v10 = vld [vmem:[#allocation13 + $0x18] sm:$0xff] }
  0xb0   :  { %285 = vrot.lane.b32.xlu1 %v212_v20, %s984_s1  ;;  %287 = vrot.lane.b32.xlu2 %v213_v21, %s984_s1  ;;  %v440_v20 = vld [vmem:[#allocation13] sm:$0xff] }
  0xb1   :  { %283 = vrot.lane.b32.xlu0 %v211_v22, %s984_s1 }
  0xb8   :  { %240 = vrot.lane.b32.xlu2 %v207_v25, %s984_s1  ;;  %238 = vrot.lane.b32.xlu1 %v206_v24, %s984_s1 }
  0xb9   :  { %220 = vrot.lane.b32.xlu0 %v189_v2, %s985_s2 }
  0xc0   :  { %281 = vrot.lane.b32.xlu2 %v210_v26, %s984_s1  ;;  %218 = vrot.lane.b32.xlu1 %v188_v7, %s985_s2  ;;  %v401_v7 = vld [vmem:[#allocation7] sm:$0xff] }
  0xc1   :  { %214 = vrot.lane.b32.xlu0 %v186_v8, %s985_s2  ;;  %430 = vmatpush.msra.mxu0 %v401_v7 }
  0xc3   :  { %550 = vmatpush.msrb.mxu0 %v443_v10 }
  0xc5   :  { %551 = vmatpush.msrb.mxu0 %v442_v11 }
  0xc7   :  { %552 = vmatpush.msrb.mxu0 %v441_v12 }
  0xc8   :  { %216 = vrot.lane.b32.xlu2 %v187_v4, %s985_s2 }
  0xc9   :  { %553 = vmatpush.msrb.mxu0 %v440_v20 }
 0x102   :  { %v245_v27 = vpop.permute.xlu2 %244 }
 0x103   :  { %708 = vmatpush.xpose.msk.msrb.mxu1 %vm156_vm0, %v245_v27 }
 0x10a   :  { %v288_v28 = vpop.permute.xlu2 %287 }
 0x10b   :  { %713 = vmatpush.xpose.msk.msra.mxu2 %vm156_vm0, %v288_v28 }
 0x112   :  { %v241_v30 = vpop.permute.xlu2 %240 }
 0x11a   :  { %v243_v29 = vpop.permute.xlu0 %242  ;;  %v282_v33 = vpop.permute.xlu2 %281 }
 0x11b   :  { %709 = vmatpush.xpose.msk.msrb.mxu1 %vm156_vm0, %v243_v29 }
 0x11f   :  { %710 = vmatpush.xpose.msk.msrb.mxu1 %vm156_vm0, %v241_v30 }
 0x122   :  { %v286_v31 = vpop.permute.xlu1 %285  ;;  %v217_v36 = vpop.permute.xlu2 %216 }
 0x123   :  { %v284_v32 = vpop.permute.xlu0 %283  ;;  %714 = vmatpush.xpose.msk.msra.mxu2 %vm156_vm0, %v286_v31  ;;  %v227_v43 = vmul.f32 %v217_v36, %v181_v14  ;;  %v231_v49 = vmul.f32 %v217_v36, %v184_v19 }
 0x127   :  { %715 = vmatpush.xpose.msk.msra.mxu2 %vm156_vm0, %v284_v32 }
 0x12a   :  { %v239_v34 = vpop.permute.xlu1 %238 }
 0x12b   :  { %v221_v35 = vpop.permute.xlu0 %220  ;;  %711 = vmatpush.xpose.msk.msrb.mxu1 %vm156_vm0, %v239_v34  ;;  %716 = vmatpush.xpose.msk.msra.mxu2 %vm156_vm0, %v282_v33 }
 0x12c   :  { %v229_v38 = vmul.f32 %v221_v35, %v181_v14  ;;  %v233_v39 = vmul.f32 %v221_v35, %v184_v19 }
 0x12e   :  { %712 = vmatmul.msk.f32.vlgmr.msrb.gmra.mxu1 %vm156_vm0, %v181_v14  ;;  %717 = vmatmul.msk.f32.vlgmr.msra.gmra.mxu2 %vm156_vm0, %v184_v19 }
 0x12f   :  { %492 = vmatpush.msrb.mxu2 %v443_v10 }
 0x131   :  { %493 = vmatpush.msrb.mxu2 %v442_v11 }
 0x132   :  { %v219_v37 = vpop.permute.xlu1 %218 }
 0x133   :  { %v215_v40 = vpop.permute.xlu0 %214  ;;  %v232_v41 = vmul.f32 %v219_v37, %v184_v19  ;;  %v228_v42 = vmul.f32 %v219_v37, %v181_v14  ;;  %494 = vmatpush.msrb.mxu2 %v441_v12 }
 0x134   :  { %v226_v44 = vmul.f32 %v215_v40, %v181_v14  ;;  %v230_v48 = vmul.f32 %v215_v40, %v184_v19  ;;  %v765_v14 = vld [vmem:[%s1176_s4] ss:$0 sm:$0xff] }
 0x135   :  { %v754_v45 = vpack.i.bf16 %v232_v41, %v233_v39  ;;  %v744_v46 = vpack.i.bf16 %v228_v42, %v229_v38  ;;  %v439_v19 = vld [vmem:[#allocation11 + $0x8] sm:$0xff]  ;;  %495 = vmatpush.msrb.mxu2 %v440_v20 }
 0x136   :  { %v749_v47 = vpack.i.bf16 %v226_v44, %v227_v43  ;;  %v759_v50 = vpack.i.bf16 %v230_v48, %v231_v49 }
 0x137   :  { %755 = vrot.lane.b32.xlu0 %v754_v45, %s985_s2  ;;  %745 = vrot.lane.b32.xlu1 %v744_v46, %s985_s2 }
 0x138   :  { %750 = vrot.lane.b32.xlu2 %v749_v47, %s985_s2  ;;  %v766_v47 = vld [vmem:[%s1177_s5] ss:$0 sm:$0xff]  ;;  %s986_s5 = smov [#allocation14]  }
 0x139   :  { %s688_s6 = sshll.u32 %s986_s5, 4  ;;  %s689_s6 = int_to_ptr.vmem [resolvable:$true] %s688_s6 }
 0x13f   :  { %760 = vrot.lane.b32.xlu1 %v759_v50, %s985_s2 }
 0x192   :  { %v751_v56 = vpop.permute.xlu2 %750 }
 0x193   :  { %v752_v60 = vunpack.i.l.bf16 %v751_v56  ;;  %v753_v62 = vunpack.i.h.bf16 %v751_v56 }
 0x1a9   :  { %v746_v54 = vpop.permute.xlu1 %745  ;;  %v756_v61 = vpop.permute.xlu0 %755 }
 0x1aa   :  { %v747_v55 = vunpack.i.l.bf16 %v746_v54  ;;  %v748_v57 = vunpack.i.h.bf16 %v746_v54  ;;  %v757_v0 = vunpack.i.l.bf16 %v756_v61  ;;  %v758_v2 = vunpack.i.h.bf16 %v756_v61 }
 0x1ab   :  { %v274_v58 = vpop.f32.mrf.mxu1 }
 0x1ac   :  { %354 = vmatpush.msra.mxu3 %v747_v55  ;;  %v321_v63 = vmul.f32 %v320_v59, %v274_v58 }
 0x1ae   :  { %355 = vmatpush.msra.mxu3 %v748_v57 }
 0x1b0   :  { %356 = vmatpush.msra.mxu3 %v752_v60 }
 0x1b1   :  { %v761_v1 = vpop.permute.xlu1 %760  ;;  %v317_v3 = vpop.f32.mrf.mxu2 }
 0x1b2   :  { %357 = vmatpush.msra.mxu3 %v753_v62  ;;  %v762_v4 = vunpack.i.l.bf16 %v761_v1  ;;  %v763_v5 = vunpack.i.h.bf16 %v761_v1  ;;  %v322_v6 = vmul.f32 %v320_v59, %v317_v3 }
 0x1b3   :  { %718 = vmatmul.msk.f32.vlgmr.msra.gmra.mxu3 %vm156_vm0, %v321_v63 }
 0x1b4   :  { %393 = vmatpush.msrb.mxu3 %v757_v0 }
 0x1b6   :  { %394 = vmatpush.msrb.mxu3 %v758_v2 }
 0x1b8   :  { %395 = vmatpush.msrb.mxu3 %v762_v4 }
 0x1ba   :  { %396 = vmatpush.msrb.mxu3 %v763_v5 }
 0x1bb   :  { %719 = vmatmul.msk.f32.vlgmr.msrb.gmra.mxu3 %vm156_vm0, %v322_v6 }
 0x236   :  { %v359_v8 = vpop.f32.mrf.mxu3 }
 0x237   :  { %720 = vmatmul.msk.f32.vlgmr.msra.gmra.mxu0 %vm156_vm0, %v359_v8 }
 0x23e   :  { %v398_v9 = vpop.f32.mrf.mxu3 }
 0x23f   :  { %721 = vmatmul.msk.f32.gmra.mxu0 %vm156_vm0, %v398_v9 }
 0x2b4   :  { %v432_v13 = vpop.f32.mrf.mxu0 }
 0x2b5   :  { %v433_v17 = vadd.f32 %v765_v14, %v432_v13 }
 0x2bc   :  { %v435_v15 = vpop.f32.mrf.mxu0 }
 0x2bd   :  { %v436_v16 = vadd.f32 %v765_v14, %v435_v15 }
 0x2bf   :  { %465 = vmatpush.msra.mxu1 %v436_v16 }
 0x2c1   :  { %466 = vmatpush.msra.mxu1 %v433_v17 }
 0x2c2   :  { %722 = vmatmul.msk.f32.vlgmr.msra.gmra.mxu1 %vm444_vm1, %v438_v18 }
 0x2ca   :  { %723 = vmatmul.msk.f32.gmra.mxu1 %vm444_vm1, %v439_v19 }
 0x33f   :  { %v468_v21 = vpop.f32.mrf.mxu1 }
 0x340   :  { %724 = vmatmul.msk.f32.vlgmr.msrb.gmra.mxu2 %vm156_vm0, %v468_v21 }
 0x347   :  { %v471_v22 = vpop.f32.mrf.mxu1 }
 0x348   :  { %725 = vmatmul.msk.f32.gmra.mxu2 %vm156_vm0, %v471_v22 }
 0x3c3   :  { %v497_v23 = vpop.f32.mrf.mxu2 }
 0x3c4   :  { %v503_v24 = vmul.f32 0.015625, %v497_v23 }
 0x3c6   :  { %v505_v27 = vsub.f32 %v433_v17, %v503_v24  ;;  %v678_v24 = vlaneseq }
 0x3c8   :  { %v507_v30 = vmul.f32 %v505_v27, %v505_v27  ;;  %vm680_vm11 = vcmp.lt.s32.totalorder %v678_v24, 256 }
 0x3cb   :  { %v500_v25 = vpop.f32.mrf.mxu2 }
 0x3cc   :  { %v504_v26 = vmul.f32 0.015625, %v500_v25 }
 0x3ce   :  { %v506_v28 = vsub.f32 %v436_v16, %v504_v26 }
 0x3d0   :  { %v508_v29 = vmul.f32 %v506_v28, %v506_v28 }
 0x3d2   :  { %523 = vmatpush.msra.mxu3 %v508_v29 }
 0x3d4   :  { %524 = vmatpush.msra.mxu3 %v507_v30 }
 0x3d5   :  { %726 = vmatmul.msk.f32.vlgmr.msra.gmra.mxu3 %vm444_vm1, %v438_v18 }
 0x3dd   :  { %727 = vmatmul.msk.f32.gmra.mxu3 %vm444_vm1, %v439_v19 }
 0x458   :  { %v526_v31 = vpop.f32.mrf.mxu3 }
 0x459   :  { %728 = vmatmul.msk.f32.vlgmr.msrb.gmra.mxu0 %vm156_vm0, %v526_v31 }
 0x460   :  { %v529_v32 = vpop.f32.mrf.mxu3 }
 0x461   :  { %729 = vmatmul.msk.f32.gmra.mxu0 %vm156_vm0, %v529_v32 }
 0x4d6   :  { %v555_v33 = vpop.f32.mrf.mxu0 }
 0x4d7   :  { %v561_v34 = vmul.f32 0.015625, %v555_v33 }
 0x4d9   :  { %v563_v35 = vadd.f32 1e-05, %v561_v34 }
 0x4db   :  { %768 = vrsqrt.f32 %v563_v35  ;;  %vm571_vm3 = vweird.f32 %v563_v35 }
 0x4de   :  { %v558_v36 = vpop.f32.mrf.mxu0 }
 0x4df   :  { %v562_v37 = vmul.f32 0.015625, %v558_v36 }
 0x4e1   :  { %v769_v38 = vpop.eup %768  ;;  %v564_v39 = vadd.f32 1e-05, %v562_v37 }
 0x4e2   :  { %v566_v40 = vmul.f32 %v769_v38, %v563_v35  ;;  %vm572_vm2 = vweird.f32 %v769_v38 }
 0x4e3   :  { %770 = vrsqrt.f32 %v564_v39  ;;  %vm573_vm4 = vmor %vm571_vm3, %vm572_vm2  ;;  %vm581_vm6 = vweird.f32 %v564_v39 }
 0x4e4   :  { %v567_v41 = vmul.f32 %v769_v38, %v566_v40 }
 0x4e6   :  { %v568_v42 = vmul.f32 0.5, %v567_v41 }
 0x4e8   :  { %v569_v43 = vsub.f32 1.5, %v568_v42 }
 0x4e9   :  { %v771_v44 = vpop.eup %770 }
 0x4ea   :  { %v570_v45 = vmul.f32 %v769_v38, %v569_v43  ;;  %v576_v46 = vmul.f32 %v771_v44, %v564_v39  ;;  %vm582_vm5 = vweird.f32 %v771_v44 }
 0x4eb   :  { %vm583_vm7 = vmor %vm581_vm6, %vm582_vm5 }
 0x4ec   :  { %v574_v48 = vsel %vm573_vm4, %v769_v38, %v570_v45  ;;  %v577_v49 = vmul.f32 %v771_v44, %v576_v46 }
 0x4ed   :  { %v585_v50 = vmul.f32 %v574_v48, %v505_v27 }
 0x4ee   :  { %v578_v52 = vmul.f32 0.5, %v577_v49 }
 0x4ef   :  { %v591_v53 = vmul.f32 %v766_v47, %v585_v50 }
 0x4f0   :  { %v579_v54 = vsub.f32 1.5, %v578_v52 }
 0x4f1   :  { %v597_v55 = vadd.f32 %v767_v51, %v591_v53 }
 0x4f2   :  { %v580_v56 = vmul.f32 %v771_v44, %v579_v54 }
 0x4f3   :  { %v637_v57 = vrot.slane %v597_v55, 6  ;;  %v629_v58 = vrot.slane %v597_v55, 5  ;;  %v601_v59 = vrot.slane %v597_v55, 1  ;;  %v645_v0 = vrot.slane %v597_v55, 7 }
 0x4f4   :  { %v584_v60 = vsel %vm583_vm7, %v771_v44, %v580_v56  ;;  %v609_v1 = vrot.slane %v597_v55, 2  ;;  %v617_v8 = vrot.slane %v597_v55, 3  ;;  %v625_v17 = vrot.slane %v597_v55, 4 }
 0x4f5   :  { %v586_v61 = vmul.f32 %v584_v60, %v506_v28  ;;  %639 = vrot.lane.b32.xlu1 %v637_v57, %s985_s2  ;;  %631 = vrot.lane.b32.xlu2 %v629_v58, %s983_s10 }
 0x4f6   :  { %603 = vrot.lane.b32.xlu0 %v601_v59, %s983_s10 }
 0x4f7   :  { %v592_v62 = vmul.f32 %v766_v47, %v586_v61 }
 0x4f9   :  { %v598_v63 = vadd.f32 %v767_v51, %v592_v62 }
 0x4fb   :  { %v630_v2 = vrot.slane %v598_v63, 5  ;;  %v638_v3 = vrot.slane %v598_v63, 6  ;;  %v602_v4 = vrot.slane %v598_v63, 1  ;;  %v646_v5 = vrot.slane %v598_v63, 7 }
 0x4fc   :  { %v610_v6 = vrot.slane %v598_v63, 2  ;;  %v618_v7 = vrot.slane %v598_v63, 3  ;;  %v626_v16 = vrot.slane %v598_v63, 4 }
 0x4fd   :  { %647 = vrot.lane.b32.xlu2 %v645_v0, %s984_s1  ;;  %611 = vrot.lane.b32.xlu1 %v609_v1, %s985_s2 }
 0x4fe   :  { %633 = vrot.lane.b32.xlu0 %v630_v2, %s983_s10 }
 0x505   :  { %641 = vrot.lane.b32.xlu2 %v638_v3, %s985_s2  ;;  %605 = vrot.lane.b32.xlu1 %v602_v4, %s983_s10 }
 0x506   :  { %649 = vrot.lane.b32.xlu0 %v646_v5, %s984_s1 }
 0x50d   :  { %613 = vrot.lane.b32.xlu2 %v610_v6, %s985_s2  ;;  %621 = vrot.lane.b32.xlu1 %v618_v7, %s984_s1 }
 0x50e   :  { %619 = vrot.lane.b32.xlu0 %v617_v8, %s984_s1 }
 0x54f   :  { %v632_v9 = vpop.permute.xlu2 %631 }
 0x550   :  { %v661_v21 = vsel %vm156_vm0, %v625_v17, %v632_v9 }
 0x557   :  { %v648_v12 = vpop.permute.xlu2 %647 }
 0x55f   :  { %v642_v15 = vpop.permute.xlu2 %641 }
 0x567   :  { %v640_v10 = vpop.permute.xlu1 %639  ;;  %v614_v28 = vpop.permute.xlu2 %613 }
 0x568   :  { %v604_v11 = vpop.permute.xlu0 %603  ;;  %v663_v22 = vsel %vm655_vm8, %v661_v21, %v640_v10 }
 0x569   :  { %v665_v27 = vsel %vm658_vm9, %v663_v22, %v648_v12  ;;  %v653_v29 = vsel %vm156_vm0, %v597_v55, %v604_v11 }
 0x56a   :  { %v671_v33 = vrot.slane %v665_v27, 7 }
 0x56f   :  { %v612_v13 = vpop.permute.xlu1 %611 }
 0x570   :  { %v634_v14 = vpop.permute.xlu0 %633  ;;  %v656_v34 = vsel %vm655_vm8, %v653_v29, %v612_v13 }
 0x571   :  { %v662_v19 = vsel %vm156_vm0, %v626_v16, %v634_v14 }
 0x572   :  { %v664_v23 = vsel %vm655_vm8, %v662_v19, %v642_v15 }
 0x577   :  { %v606_v18 = vpop.permute.xlu1 %605 }
 0x578   :  { %v650_v20 = vpop.permute.xlu0 %649  ;;  %v654_v26 = vsel %vm156_vm0, %v598_v63, %v606_v18 }
 0x579   :  { %v666_v25 = vsel %vm658_vm9, %v664_v23, %v650_v20  ;;  %v657_v31 = vsel %vm655_vm8, %v654_v26, %v614_v28 }
 0x57a   :  { %v672_v30 = vrot.slane %v666_v25, 7 }
 0x57f   :  { %v622_v32 = vpop.permute.xlu1 %621 }
 0x580   :  { %v620_v35 = vpop.permute.xlu0 %619  ;;  %v660_v36 = vsel %vm658_vm9, %v657_v31, %v622_v32 }
 0x581   :  { %v659_v37 = vsel %vm658_vm9, %v656_v34, %v620_v35  ;;  %v675_v38 = vsel %vm673_vm10, %v660_v36, %v672_v30 }
 0x582   :  { %v674_v39 = vsel %vm673_vm10, %v659_v37, %v671_v33  ;;  %683 = vst.msk [vmem:[#allocation14 + $0x2] sm:$0x3] %vm680_vm11, %v675_v38 }
 0x583   :  { %682 = vst.msk [vmem:[#allocation14] sm:$0x3] %vm680_vm11, %v674_v39 }
 0x584   :  { %696 = dma.vmem_to_hbm [thread:$0]  %s689_s6, 64, %s691_s18, [#allocation4], %s983_s10, %s983_s10, %s987_s11  }
 0x585   :  { %972 = dma.done.wait [#allocation4], 64  }
 0x586   :  { %973 = vsyncadd [#allocation4], 4294967232 }
 0x587   :  { %701 = vsyncpa [#allocation3], 1 }
 0x588   :  { %702 = vsyncpa [#allocation6], 1 }
 0x589   :  { %703 = vsyncpa [#allocation9], 1 }
 0x58a   :  { %704 = vsyncpa [#allocation12], 1 }
 0x58b   :  { %705 = vsyncpa [#allocation4], 1 }

</bundles_post_ra>
